<compile_context>
chip_gen: v6e
topology: v6e:2x2x1
jax: 0.10.0
libtpu: 0.0.40
codegen_flags: <defaults>
</compile_context>

<pallas_src>
import functools

import jax
import jax.numpy as jnp
import numpy as np
from jax import lax
from jax.experimental import pallas as pl
from jax.experimental.pallas import tpu as pltpu

_LANE = 128


def _round_up(v, m):
    return ((v + m - 1) // m) * m


# ------------------------------ fused kernel ---------------------------------
def _gcn_forward_kernel(a_ref, x_ref, w1_ref, b1_ref, w2_ref, b2_ref, out_ref,
                        *, num_classes):
    """conv1 -> relu -> (dropout: eval identity) -> conv2 -> log_softmax."""
    a = a_ref[...]                                        # (Np, Np) normalized adjacency

    # Layer 1: aggregate(A_norm, X @ W1) + b1, then ReLU.
    xw = jnp.dot(x_ref[...], w1_ref[...], preferred_element_type=jnp.float32)
    h1 = jnp.dot(a, xw, preferred_element_type=jnp.float32) + b1_ref[...]
    h1 = jnp.maximum(h1, 0.0)

    # TODO(synk): F.dropout is identity in eval mode; training-mode dropout
    # (random mask via pltpu.prng_*) is intentionally not implemented.

    # Layer 2: aggregate(A_norm, h1 @ W2) + b2.
    hw = jnp.dot(h1, w2_ref[...], preferred_element_type=jnp.float32)
    h2 = jnp.dot(a, hw, preferred_element_type=jnp.float32) + b2_ref[...]

    # Mask the lane-padded class columns so they do not perturb log_softmax.
    c_pad = out_ref.shape[-1]
    class_mask = lax.broadcasted_iota(jnp.int32, (1, c_pad), 1) < num_classes
    h2 = jnp.where(class_mask, h2, jnp.float32(-1e30))

    # Numerically stable log_softmax along the class axis.
    m = jnp.max(h2, axis=-1, keepdims=True)
    s = h2 - m
    lse = jnp.log(jnp.sum(jnp.exp(s), axis=-1, keepdims=True))
    out_ref[...] = (s - lse).astype(out_ref.dtype)


# ----------------------------- graph preprocessing ----------------------------
def _build_norm_adj(edge_index, num_nodes):
    """Dense D^{-1/2} (A + I) D^{-1/2}; message flows edge_index[0] -> edge_index[1]."""
    src = edge_index[0]
    dst = edge_index[1]
    a = jnp.zeros((num_nodes, num_nodes), jnp.float32)
    a = a.at[dst, src].add(1.0)                              # scatter edges
    a = a + jnp.eye(num_nodes, dtype=jnp.float32)            # add self-loops
    deg = jnp.sum(a, axis=1)
    d_inv_sqrt = lax.rsqrt(jnp.maximum(deg, 1e-12))
    return d_inv_sqrt[:, None] * a * d_inv_sqrt[None, :]


def _pad2(arr, rows, cols):
    arr = arr.astype(jnp.float32)
    return jnp.zeros((rows, cols), jnp.float32).at[:arr.shape[0], :arr.shape[1]].set(arr)


# --------------------------------- wrapper ------------------------------------
def gcn_forward(params, x, edge_index):
    """Mirror of GCN.forward in eval mode. x: (N, F); edge_index: (2, E) int."""
    n, f_in = x.shape
    hidden = params["w1"].shape[1]
    num_classes = params["w2"].shape[1]

    # Lane-align every contraction / output minor dim (unmasked vld/vst, clean
    # MXU tiles).  Zero padding is exact for the matmuls; padded class columns
    # are masked inside the kernel before log_softmax.
    n_pad = _round_up(n, _LANE)
    f_pad = _round_up(f_in, _LANE)
    h_pad = _round_up(hidden, _LANE)
    c_pad = _round_up(num_classes, _LANE)

    # TODO(synk): the edge_index scatter (dense normalized adjacency build) has
    # no clean Pallas equivalent; it is built with JAX ops and fed to the kernel.
    a_norm = _build_norm_adj(edge_index, n)

    a_pad = _pad2(a_norm, n_pad, n_pad)
    x_pad = _pad2(x, n_pad, f_pad)
    w1_pad = _pad2(params["w1"], f_pad, h_pad)
    b1_pad = _pad2(params["b1"], 1, h_pad)
    w2_pad = _pad2(params["w2"], h_pad, c_pad)
    b2_pad = _pad2(params["b2"], 1, c_pad)

    kernel = functools.partial(_gcn_forward_kernel, num_classes=num_classes)
    vmem_spec = pl.BlockSpec(memory_space=pltpu.MemorySpace.VMEM)

    out = pl.pallas_call(
        kernel,
        out_shape=jax.ShapeDtypeStruct((n_pad, c_pad), jnp.float32),
        # No grid: all operands (a few hundred KiB of weights + activations)
        # are resident in VMEM for a single invocation.
        in_specs=[vmem_spec] * 6,
        out_specs=vmem_spec,
    )(a_pad, x_pad, w1_pad, b1_pad, w2_pad, b2_pad)
    return out[:n, :num_classes]


# ----------------------------- pure-JAX reference -----------------------------
def _reference_forward(params, x, edge_index):
    a_norm = _build_norm_adj(edge_index, x.shape[0])
    h1 = jax.nn.relu(a_norm @ (x @ params["w1"]) + params["b1"])
    h2 = a_norm @ (h1 @ params["w2"]) + params["b2"]
    return jax.nn.log_softmax(h2, axis=1)


# --------------------------------- params -------------------------------------
def init_params(key, n_features, hidden_size, num_classes):
    """Glorot-uniform weights, small uniform biases (shapes match GCNConv)."""
    k1, k2, k3, k4 = jax.random.split(key, 4)

    def glorot(k, fan_in, fan_out):
        lim = np.sqrt(6.0 / (fan_in + fan_out))
        return jax.random.uniform(k, (fan_in, fan_out), jnp.float32, -lim, lim)

    return {
        "w1": glorot(k1, n_features, hidden_size),
        "b1": jax.random.uniform(k2, (1, hidden_size), jnp.float32, -0.1, 0.1),
        "w2": glorot(k3, hidden_size, num_classes),
        "b2": jax.random.uniform(k4, (1, num_classes), jnp.float32, -0.1, 0.1),
    }


if __name__ == "__main__":
    n_features, hidden_size, num_classes = 8, 32, 4
    num_nodes = 16

    key = jax.random.PRNGKey(0)
    key, kx, kp = jax.random.split(key, 3)
    x = jax.random.normal(kx, (num_nodes, n_features), jnp.float32)

    # Deterministic bidirectional ring graph (no duplicates, no self-loops).
    src = np.arange(num_nodes)
    dst = (src + 1) % num_nodes
    edge_index = jnp.asarray(
        np.stack([np.concatenate([src, dst]), np.concatenate([dst, src])]),
        dtype=jnp.int32)

    params = init_params(kp, n_features, hidden_size, num_classes)

    out = gcn_forward(params, x, edge_index)
    out = jax.block_until_ready(out)

    ref = _reference_forward(params, x, edge_index)
    np.testing.assert_allclose(np.asarray(out), np.asarray(ref),
                               rtol=1e-5, atol=1e-5)

    assert out.shape == (num_nodes, num_classes)
    print("KERNEL_OK")
</pallas_src>

<mosaic_0001>
module attributes {stable_mosaic.version = 11 : i64} {
  func.func @_gcn_forward_kernel(%arg0: memref<128x128xf32, #tpu.memory_space<vmem>>, %arg1: memref<128x128xf32, #tpu.memory_space<vmem>>, %arg2: memref<128x128xf32, #tpu.memory_space<vmem>>, %arg3: memref<1x128xf32, #tpu.memory_space<vmem>>, %arg4: memref<128x128xf32, #tpu.memory_space<vmem>>, %arg5: memref<1x128xf32, #tpu.memory_space<vmem>>, %arg6: memref<128x128xf32, #tpu.memory_space<vmem>>) attributes {dimension_semantics = [], scalar_prefetch = 0 : i64, scratch_operands = 0 : i64, tpu.core_type = #tpu.core_type<tc>} {
    %c0 = arith.constant 0 : index
    %c0_0 = arith.constant 0 : index
    %0 = vector.load %arg0[%c0, %c0_0] : memref<128x128xf32, #tpu.memory_space<vmem>>, vector<128x128xf32>
    %c0_1 = arith.constant 0 : index
    %c0_2 = arith.constant 0 : index
    %1 = vector.load %arg1[%c0_1, %c0_2] : memref<128x128xf32, #tpu.memory_space<vmem>>, vector<128x128xf32>
    %c0_3 = arith.constant 0 : index
    %c0_4 = arith.constant 0 : index
    %2 = vector.load %arg2[%c0_3, %c0_4] : memref<128x128xf32, #tpu.memory_space<vmem>>, vector<128x128xf32>
    %cst = arith.constant dense<0.000000e+00> : vector<128x128xf32>
    %3 = tpu.matmul %1, %2, %cst {dimension_numbers = #tpu.dot_dimension_numbers<[1], [0], [0], [1], [0, 0, 1, 1], [], []>} : vector<128x128xf32>, vector<128x128xf32>, vector<128x128xf32> -> vector<128x128xf32>
    %cst_5 = arith.constant dense<0.000000e+00> : vector<128x128xf32>
    %4 = tpu.matmul %0, %3, %cst_5 {dimension_numbers = #tpu.dot_dimension_numbers<[1], [0], [0], [1], [0, 0, 1, 1], [], []>} : vector<128x128xf32>, vector<128x128xf32>, vector<128x128xf32> -> vector<128x128xf32>
    %c0_6 = arith.constant 0 : index
    %c0_7 = arith.constant 0 : index
    %5 = vector.load %arg3[%c0_6, %c0_7] : memref<1x128xf32, #tpu.memory_space<vmem>>, vector<1x128xf32>
    %6 = vector.broadcast %5 : vector<1x128xf32> to vector<128x128xf32>
    %7 = arith.addf %4, %6 : vector<128x128xf32>
    %cst_8 = arith.constant 0.000000e+00 : f32
    %8 = vector.broadcast %cst_8 : f32 to vector<128x128xf32>
    %9 = arith.maximumf %7, %8 : vector<128x128xf32>
    %c0_9 = arith.constant 0 : index
    %c0_10 = arith.constant 0 : index
    %10 = vector.load %arg4[%c0_9, %c0_10] : memref<128x128xf32, #tpu.memory_space<vmem>>, vector<128x128xf32>
    %cst_11 = arith.constant dense<0.000000e+00> : vector<128x128xf32>
    %11 = tpu.matmul %9, %10, %cst_11 {dimension_numbers = #tpu.dot_dimension_numbers<[1], [0], [0], [1], [0, 0, 1, 1], [], []>} : vector<128x128xf32>, vector<128x128xf32>, vector<128x128xf32> -> vector<128x128xf32>
    %cst_12 = arith.constant dense<0.000000e+00> : vector<128x128xf32>
    %12 = tpu.matmul %0, %11, %cst_12 {dimension_numbers = #tpu.dot_dimension_numbers<[1], [0], [0], [1], [0, 0, 1, 1], [], []>} : vector<128x128xf32>, vector<128x128xf32>, vector<128x128xf32> -> vector<128x128xf32>
    %c0_13 = arith.constant 0 : index
    %c0_14 = arith.constant 0 : index
    %13 = vector.load %arg5[%c0_13, %c0_14] : memref<1x128xf32, #tpu.memory_space<vmem>>, vector<1x128xf32>
    %14 = vector.broadcast %13 : vector<1x128xf32> to vector<128x128xf32>
    %15 = arith.addf %12, %14 : vector<128x128xf32>
    %16 = tpu.iota {dimensions = array<i32: 1>} : vector<1x128xi32>
    %c4_i32 = arith.constant 4 : i32
    %17 = vector.broadcast %c4_i32 : i32 to vector<1x128xi32>
    %18 = arith.cmpi slt, %16, %17 : vector<1x128xi32>
    %cst_15 = arith.constant -1.000000e+30 : f32
    %19 = vector.shape_cast %18 : vector<1x128xi1> to vector<1x128xi1>
    %20 = vector.broadcast %19 : vector<1x128xi1> to vector<128x128xi1>
    %21 = vector.broadcast %cst_15 : f32 to vector<128x128xf32>
    %22 = arith.select %20, %15, %21 : vector<128x128xi1>, vector<128x128xf32>
    %cst_16 = arith.constant dense<0xFF800000> : vector<128xf32>
    %23 = vector.multi_reduction <maximumf>, %22, %cst_16 [1] : vector<128x128xf32> to vector<128xf32>
    %24 = vector.shape_cast %23 : vector<128xf32> to vector<128x1xf32>
    %25 = vector.broadcast %24 : vector<128x1xf32> to vector<128x128xf32>
    %26 = arith.subf %22, %25 : vector<128x128xf32>
    %27 = math.exp %26 : vector<128x128xf32>
    %cst_17 = arith.constant dense<0.000000e+00> : vector<128xf32>
    %28 = vector.multi_reduction <add>, %27, %cst_17 [1] : vector<128x128xf32> to vector<128xf32>
    %29 = vector.shape_cast %28 : vector<128xf32> to vector<128x1xf32>
    %30 = math.log %29 : vector<128x1xf32>
    %31 = vector.broadcast %30 : vector<128x1xf32> to vector<128x128xf32>
    %32 = arith.subf %26, %31 : vector<128x128xf32>
    %c0_18 = arith.constant 0 : index
    %c0_19 = arith.constant 0 : index
    %33 = vector.load %arg6[%c0_18, %c0_19] : memref<128x128xf32, #tpu.memory_space<vmem>>, vector<128x128xf32>
    tpu.vector_store %arg6[%c0_18, %c0_19], %32 {strides = array<i32>} : memref<128x128xf32, #tpu.memory_space<vmem>>, vector<128x128xf32>,
    return
  }
}

</mosaic_0001>

<bundles_post_ra>
// kernel: tpu_custom_call.1
= control target key start
LH: loop header
LB: loop body
LE: loop exit
PB: predicated region body
PF: predicated region fallthrough
CT: control target
= control target key end

     0   :  { %11 = vsyncpa [#allocation3], 0  ;;  %s1759_s0 = inlined_call_operand.hbm [shape: f32[128,128], index: 0, kind: input, shape index: {}]   ;;  %s1760_s1 = inlined_call_operand.hbm [shape: f32[128,128], index: 1, kind: input, shape index: {}]   ;;  %s1761_s2 = inlined_call_operand.hbm [shape: f32[128,128], index: 2, kind: input, shape index: {}]   ;;  %s1762_s3 = inlined_call_operand.vmem [shape: f32[1,128], index: 3, kind: input, shape index: {}]   ;;  %s1763_s4 = inlined_call_operand.hbm [shape: f32[128,128], index: 4, kind: input, shape index: {}]   ;;  %s1764_s5 = inlined_call_operand.vmem [shape: f32[1,128], index: 5, kind: input, shape index: {}]   ;;  %s1765_s6 = inlined_call_operand.hbm [shape: f32[128,128], index: 6, kind: output, shape index: {}]  }
   0x1   :  { %12 = vsyncpa [#allocation6], 0 }
   0x2   :  { %13 = vsyncpa [#allocation9], 0 }
   0x3   :  { %14 = vsyncpa [#allocation4], 0  ;;  %s1502_s21 = smov [#allocation5]   ;;  %s1503_s23 = smov [#allocation2]  }
   0x4   :  { %s32_s22 = sshll.u32 %s1502_s21, 4  ;;  %s20_s24 = sshll.u32 %s1503_s23, 4  ;;  %s33_s22 = int_to_ptr.vmem [resolvable:$true] %s32_s22  ;;  %s21_s24 = int_to_ptr.vmem [resolvable:$true] %s20_s24 }
   0x5   :  { %s1402_s25 = scalar_lea.vmem %s33_s22, 2048  ;;  %p1407_p1 = scmp.lt.s32.totalorder %s33_s22, %s33_s22 }
   0x6   :  { %p1403_p0 = scmp.ne.s32.totalorder %s33_s22, %s1402_s25  ;;  %p1408_p2 = scmp.lt.s32.totalorder %s1402_s25, %s1402_s25 }
   0x8   :  { %p1409_p3 = por %p1408_p2, %p1407_p1 }
   0xa   :  { %p1410_p4 = pnand %p1409_p3, %p1403_p0 }
   0xc   :  { %1413 = shalt.err (!%p1410_p4)
}
   0xd   :  { %s1504_s26 = smov 128   ;;  %s1505_s27 = smov 8  }
   0xe   :  { %38 = dma.hbm_to_vmem [thread:$0]  %s1760_s1, 2048, %s33_s22, [#allocation6], %s1504_s26, %s1504_s26, %s1505_s27  }
   0xf   :  { %s1422_s30 = scalar_lea.vmem %s21_s24, 2048  ;;  %p1427_p6 = scmp.lt.s32.totalorder %s21_s24, %s21_s24 }
  0x10   :  { %p1423_p5 = scmp.ne.s32.totalorder %s21_s24, %s1422_s30  ;;  %p1428_p7 = scmp.lt.s32.totalorder %s1422_s30, %s1422_s30 }
  0x12   :  { %p1429_p8 = por %p1428_p7, %p1427_p6 }
  0x14   :  { %p1430_p9 = pnand %p1429_p8, %p1423_p5 }
  0x16   :  { %1433 = shalt.err (!%p1430_p9)
}
  0x17   :  { %26 = dma.hbm_to_vmem [thread:$0]  %s1759_s0, 2048, %s21_s24, [#allocation3], %s1504_s26, %s1504_s26, %s1505_s27  }
  0x18   :  { %s1506_s9 = smov [#allocation7]   ;;  %s1507_s11 = smov [#allocation8]  }
  0x19   :  { %s44_s10 = sshll.u32 %s1506_s9, 4  ;;  %s58_s12 = sshll.u32 %s1507_s11, 4  ;;  %s45_s10 = int_to_ptr.vmem [resolvable:$true] %s44_s10  ;;  %s59_s12 = int_to_ptr.vmem [resolvable:$true] %s58_s12 }
  0x1a   :  { %s1442_s1 = scalar_lea.vmem %s45_s10, 2048  ;;  %p1447_p11 = scmp.lt.s32.totalorder %s45_s10, %s45_s10 }
  0x1b   :  { %p1443_p10 = scmp.ne.s32.totalorder %s45_s10, %s1442_s1  ;;  %p1448_p12 = scmp.lt.s32.totalorder %s1442_s1, %s1442_s1 }
  0x1d   :  { %p1449_p13 = por %p1448_p12, %p1447_p11 }
  0x1f   :  { %p1450_p0 = pnand %p1449_p13, %p1443_p10 }
  0x21   :  { %1453 = shalt.err (!%p1450_p0)
}
  0x22   :  { %50 = dma.hbm_to_vmem [thread:$0]  %s1761_s2, 2048, %s45_s10, [#allocation6], %s1504_s26, %s1504_s26, %s1505_s27  }
  0x23   :  { %s1462_s0 = scalar_lea.vmem %s59_s12, 2048  ;;  %p1467_p2 = scmp.lt.s32.totalorder %s59_s12, %s59_s12 }
  0x24   :  { %p1463_p1 = scmp.ne.s32.totalorder %s59_s12, %s1462_s0  ;;  %p1468_p3 = scmp.lt.s32.totalorder %s1462_s0, %s1462_s0 }
  0x26   :  { %p1469_p4 = por %p1468_p3, %p1467_p2 }
  0x28   :  { %p1470_p5 = pnand %p1469_p4, %p1463_p1 }
  0x2a   :  { %1473 = shalt.err (!%p1470_p5)
}
  0x2b   :  { %64 = dma.hbm_to_vmem [thread:$0]  %s1763_s4, 2048, %s59_s12, [#allocation9], %s1504_s26, %s1504_s26, %s1505_s27  }
  0x2c   :  { %1494 = dma.done.wait [#allocation3], 2048  }
  0x2d   :  { %1495 = vsyncadd [#allocation3], 4294965248 }
  0x2e   :  { %1496 = dma.done.wait [#allocation6], 4096  }
  0x2f   :  { %1497 = vsyncadd [#allocation6], 4294963200 }
  0x30   :  { %1498 = dma.done.wait [#allocation9], 2048  }
  0x31   :  { %1499 = vsyncadd [#allocation9], 4294965248  ;;  %v126_v0 = vld [vmem:[#allocation7 + $0x78] sm:$0xff]  ;;  %v125_v1 = vld [vmem:[#allocation7 + $0x70] sm:$0xff] }
  0x32   :  { %1099 = vmatprep.subr.mxu0 %v126_v0  ;;  %v124_v2 = vld [vmem:[#allocation7 + $0x68] sm:$0xff]  ;;  %v123_v3 = vld [vmem:[#allocation7 + $0x60] sm:$0xff]  ;;  %v122_v5 = vld [vmem:[#allocation7 + $0x58] sm:$0xff] }
  0x33   :  { %1100 = vmatpush3.msra.mxu0 %v126_v0  ;;  %v95_v4 = vld [vmem:[#allocation5] sm:$0xff]  ;;  %v121_v6 = vld [vmem:[#allocation7 + $0x50] sm:$0xff]  ;;  %v120_v7 = vld [vmem:[#allocation7 + $0x48] sm:$0xff] }
  0x34   :  { %1101 = vmatprep.subr.mxu0 %v125_v1  ;;  %1131 = vmatprep.mubr.f32.mxu0 %v95_v4  ;;  %v119_v8 = vld [vmem:[#allocation7 + $0x40] sm:$0xff]  ;;  %v118_v9 = vld [vmem:[#allocation7 + $0x38] sm:$0xff]  ;;  %v117_v10 = vld [vmem:[#allocation7 + $0x30] sm:$0xff] }
  0x35   :  { %1102 = vmatpush3.msra.mxu0 %v125_v1  ;;  %v116_v11 = vld [vmem:[#allocation7 + $0x28] sm:$0xff]  ;;  %v115_v12 = vld [vmem:[#allocation7 + $0x20] sm:$0xff]  ;;  %v114_v13 = vld [vmem:[#allocation7 + $0x18] sm:$0xff] }
  0x36   :  { %1103 = vmatprep.subr.mxu0 %v124_v2  ;;  %v113_v14 = vld [vmem:[#allocation7 + $0x10] sm:$0xff]  ;;  %v112_v15 = vld [vmem:[#allocation7 + $0x8] sm:$0xff]  ;;  %v111_v16 = vld [vmem:[#allocation7] sm:$0xff] }
  0x37   :  { %1104 = vmatpush3.msra.mxu0 %v124_v2  ;;  %v96_v17 = vld [vmem:[#allocation5 + $0x8] sm:$0xff]  ;;  %v97_v18 = vld [vmem:[#allocation5 + $0x10] sm:$0xff]  ;;  %v98_v19 = vld [vmem:[#allocation5 + $0x18] sm:$0xff] }
  0x38   :  { %1105 = vmatprep.subr.mxu0 %v123_v3  ;;  %v99_v20 = vld [vmem:[#allocation5 + $0x20] sm:$0xff]  ;;  %v100_v21 = vld [vmem:[#allocation5 + $0x28] sm:$0xff]  ;;  %v101_v22 = vld [vmem:[#allocation5 + $0x30] sm:$0xff] }
  0x39   :  { %1106 = vmatpush3.msra.mxu0 %v123_v3  ;;  %v102_v23 = vld [vmem:[#allocation5 + $0x38] sm:$0xff]  ;;  %v103_v24 = vld [vmem:[#allocation5 + $0x40] sm:$0xff]  ;;  %v104_v25 = vld [vmem:[#allocation5 + $0x48] sm:$0xff] }
  0x3a   :  { %1107 = vmatprep.subr.mxu0 %v122_v5  ;;  %v105_v26 = vld [vmem:[#allocation5 + $0x50] sm:$0xff]  ;;  %v106_v27 = vld [vmem:[#allocation5 + $0x58] sm:$0xff]  ;;  %v107_v28 = vld [vmem:[#allocation5 + $0x60] sm:$0xff] }
  0x3b   :  { %1108 = vmatpush3.msra.mxu0 %v122_v5  ;;  %v108_v29 = vld [vmem:[#allocation5 + $0x68] sm:$0xff]  ;;  %v109_v30 = vld [vmem:[#allocation5 + $0x70] sm:$0xff]  ;;  %v110_v31 = vld [vmem:[#allocation5 + $0x78] sm:$0xff] }
  0x3c   :  { %1109 = vmatprep.subr.mxu0 %v121_v6  ;;  %v1568_v32 = vld [vmem:[#allocation2] sm:$0xff]  ;;  %v455_v33 = vld [vmem:[#allocation8 + $0x78] sm:$0xff]  ;;  %v454_v34 = vld [vmem:[#allocation8 + $0x70] sm:$0xff] }
  0x3d   :  { %1110 = vmatpush3.msra.mxu0 %v121_v6  ;;  %1187 = vmatprep.mubr.f32.mxu1 %v1568_v32  ;;  %v453_v35 = vld [vmem:[#allocation8 + $0x68] sm:$0xff]  ;;  %v452_v36 = vld [vmem:[#allocation8 + $0x60] sm:$0xff]  ;;  %v451_v37 = vld [vmem:[#allocation8 + $0x58] sm:$0xff] }
  0x3e   :  { %1111 = vmatprep.subr.mxu0 %v120_v7  ;;  %v450_v38 = vld [vmem:[#allocation8 + $0x50] sm:$0xff]  ;;  %v449_v39 = vld [vmem:[#allocation8 + $0x48] sm:$0xff]  ;;  %v448_v40 = vld [vmem:[#allocation8 + $0x40] sm:$0xff] }
  0x3f   :  { %1112 = vmatpush3.msra.mxu0 %v120_v7  ;;  %v447_v41 = vld [vmem:[#allocation8 + $0x38] sm:$0xff]  ;;  %v446_v42 = vld [vmem:[#allocation8 + $0x30] sm:$0xff]  ;;  %v445_v43 = vld [vmem:[#allocation8 + $0x28] sm:$0xff] }
  0x40   :  { %1113 = vmatprep.subr.mxu0 %v119_v8  ;;  %v444_v44 = vld [vmem:[#allocation8 + $0x20] sm:$0xff]  ;;  %v1571_v61 = vld [vmem:[#allocation2 + $0x8] sm:$0xff]  ;;  %v1573_v62 = vld [vmem:[#allocation2 + $0x10] sm:$0xff] }
  0x41   :  { %1114 = vmatpush3.msra.mxu0 %v119_v8  ;;  %v1577_v63 = vld [vmem:[#allocation2 + $0x18] sm:$0xff]  ;;  %v1579_v0 = vld [vmem:[#allocation2 + $0x20] sm:$0xff]  ;;  %v1583_v1 = vld [vmem:[#allocation2 + $0x28] sm:$0xff] }
  0x42   :  { %1115 = vmatprep.subr.mxu0 %v118_v9  ;;  %v1585_v2 = vld [vmem:[#allocation2 + $0x30] sm:$0xff]  ;;  %v1589_v3 = vld [vmem:[#allocation2 + $0x38] sm:$0xff]  ;;  %v1591_v4 = vld [vmem:[#allocation2 + $0x40] sm:$0xff] }
  0x43   :  { %1116 = vmatpush3.msra.mxu0 %v118_v9  ;;  %v1595_v5 = vld [vmem:[#allocation2 + $0x48] sm:$0xff]  ;;  %v1597_v6 = vld [vmem:[#allocation2 + $0x50] sm:$0xff]  ;;  %v1601_v7 = vld [vmem:[#allocation2 + $0x58] sm:$0xff] }
  0x44   :  { %1117 = vmatprep.subr.mxu0 %v117_v10  ;;  %v1603_v8 = vld [vmem:[#allocation2 + $0x60] sm:$0xff]  ;;  %v1607_v9 = vld [vmem:[#allocation2 + $0x68] sm:$0xff] }
  0x45   :  { %1118 = vmatpush3.msra.mxu0 %v117_v10  ;;  %v1609_v10 = vld [vmem:[#allocation2 + $0x70] sm:$0xff] }
  0x46   :  { %1119 = vmatprep.subr.mxu0 %v116_v11 }
  0x47   :  { %1120 = vmatpush3.msra.mxu0 %v116_v11  ;;  %v1613_v11 = vld [vmem:[#allocation2 + $0x78] sm:$0xff] }
  0x48   :  { %1121 = vmatprep.subr.mxu0 %v115_v12 }
  0x49   :  { %1122 = vmatpush3.msra.mxu0 %v115_v12  ;;  %v443_v12 = vld [vmem:[#allocation8 + $0x18] sm:$0xff] }
  0x4a   :  { %1123 = vmatprep.subr.mxu0 %v114_v13 }
  0x4b   :  { %1124 = vmatpush3.msra.mxu0 %v114_v13  ;;  %v442_v13 = vld [vmem:[#allocation8 + $0x10] sm:$0xff] }
  0x4c   :  { %1125 = vmatprep.subr.mxu0 %v113_v14 }
  0x4d   :  { %1126 = vmatpush3.msra.mxu0 %v113_v14  ;;  %v441_v14 = vld [vmem:[#allocation8 + $0x8] sm:$0xff] }
  0x4e   :  { %1127 = vmatprep.subr.mxu0 %v112_v15 }
  0x4f   :  { %1128 = vmatpush3.msra.mxu0 %v112_v15  ;;  %v440_v15 = vld [vmem:[#allocation8] sm:$0xff] }
  0x50   :  { %1129 = vmatprep.subr.mxu0 %v111_v16 }
  0x51   :  { %1130 = vmatpush3.msra.mxu0 %v111_v16  ;;  %v969_v16 = vld [vmem:[%s1762_s3] ss:$0 sm:$0xff] }
  0x52   :  { %1132 = vmatmul.mubr.f32.vlgmr.msra.gmra.mxu0 %v96_v17  ;;  %1211 = vmatprep.subr.mxu0 %v455_v33 }
  0x53   :  { %1134 = vmatprep.mubr.f32.mxu0 %v97_v18  ;;  %1212 = vmatpush3.msra.mxu0 %v455_v33 }
  0x54   :  { %1213 = vmatprep.subr.mxu0 %v454_v34 }
  0x55   :  { %1214 = vmatpush3.msra.mxu0 %v454_v34 }
  0x56   :  { %1135 = vmatmul.mubr.f32.gmra.mxu0 %v98_v19  ;;  %1215 = vmatprep.subr.mxu0 %v453_v35 }
  0x57   :  { %1137 = vmatprep.mubr.f32.mxu0 %v99_v20  ;;  %1216 = vmatpush3.msra.mxu0 %v453_v35 }
  0x58   :  { %1217 = vmatprep.subr.mxu0 %v452_v36 }
  0x59   :  { %1218 = vmatpush3.msra.mxu0 %v452_v36 }
  0x5a   :  { %1138 = vmatmul.mubr.f32.gmra.mxu0 %v100_v21  ;;  %1219 = vmatprep.subr.mxu0 %v451_v37 }
  0x5b   :  { %1140 = vmatprep.mubr.f32.mxu0 %v101_v22  ;;  %1220 = vmatpush3.msra.mxu0 %v451_v37 }
  0x5c   :  { %1221 = vmatprep.subr.mxu0 %v450_v38 }
  0x5d   :  { %1222 = vmatpush3.msra.mxu0 %v450_v38 }
  0x5e   :  { %1141 = vmatmul.mubr.f32.gmra.mxu0 %v102_v23  ;;  %1223 = vmatprep.subr.mxu0 %v449_v39 }
  0x5f   :  { %1143 = vmatprep.mubr.f32.mxu0 %v103_v24  ;;  %1224 = vmatpush3.msra.mxu0 %v449_v39 }
  0x60   :  { %1225 = vmatprep.subr.mxu0 %v448_v40 }
  0x61   :  { %1226 = vmatpush3.msra.mxu0 %v448_v40 }
  0x62   :  { %1144 = vmatmul.mubr.f32.gmra.mxu0 %v104_v25  ;;  %1227 = vmatprep.subr.mxu0 %v447_v41 }
  0x63   :  { %1146 = vmatprep.mubr.f32.mxu0 %v105_v26  ;;  %1228 = vmatpush3.msra.mxu0 %v447_v41 }
  0x64   :  { %1229 = vmatprep.subr.mxu0 %v446_v42 }
  0x65   :  { %1230 = vmatpush3.msra.mxu0 %v446_v42 }
  0x66   :  { %1147 = vmatmul.mubr.f32.gmra.mxu0 %v106_v27  ;;  %1231 = vmatprep.subr.mxu0 %v445_v43 }
  0x67   :  { %1149 = vmatprep.mubr.f32.mxu0 %v107_v28  ;;  %1232 = vmatpush3.msra.mxu0 %v445_v43 }
  0x68   :  { %1233 = vmatprep.subr.mxu0 %v444_v44 }
  0x69   :  { %1234 = vmatpush3.msra.mxu0 %v444_v44 }
  0x6a   :  { %1150 = vmatmul.mubr.f32.gmra.mxu0 %v108_v29  ;;  %1235 = vmatprep.subr.mxu0 %v443_v12 }
  0x6b   :  { %1152 = vmatprep.mubr.f32.mxu0 %v109_v30  ;;  %1236 = vmatpush3.msra.mxu0 %v443_v12 }
  0x6c   :  { %1237 = vmatprep.subr.mxu0 %v442_v13 }
  0x6d   :  { %1238 = vmatpush3.msra.mxu0 %v442_v13 }
  0x6e   :  { %1153 = vmatmul.mubr.f32.gmra.mxu0 %v110_v31  ;;  %1239 = vmatprep.subr.mxu0 %v441_v14 }
  0x6f   :  { %1240 = vmatpush3.msra.mxu0 %v441_v14 }
  0x70   :  { %1241 = vmatprep.subr.mxu0 %v440_v15 }
  0x71   :  { %1242 = vmatpush3.msra.mxu0 %v440_v15 }
 0x112   :  { %v1133_v45 = vpop.f32.mrf.mxu0 }
 0x114   :  { %v193_v46 = vpop.f32.mrf.mxu0 }
 0x116   :  { %v1136_v47 = vpop.f32.mrf.mxu0 }
 0x118   :  { %v203_v48 = vpop.f32.mrf.mxu0 }
 0x11a   :  { %v1139_v49 = vpop.f32.mrf.mxu0 }
 0x11c   :  { %v213_v50 = vpop.f32.mrf.mxu0 }
 0x11e   :  { %v1142_v51 = vpop.f32.mrf.mxu0 }
 0x120   :  { %v223_v52 = vpop.f32.mrf.mxu0 }
 0x122   :  { %v1145_v53 = vpop.f32.mrf.mxu0 }
 0x124   :  { %v233_v54 = vpop.f32.mrf.mxu0 }
 0x126   :  { %v1148_v55 = vpop.f32.mrf.mxu0 }
 0x128   :  { %v243_v56 = vpop.f32.mrf.mxu0 }
 0x12a   :  { %v1151_v57 = vpop.f32.mrf.mxu0 }
 0x12c   :  { %v253_v58 = vpop.f32.mrf.mxu0 }
 0x12e   :  { %v1154_v59 = vpop.f32.mrf.mxu0 }
 0x12f   :  { %1155 = vmatprep.subr.mxu1 %v1154_v59 }
 0x130   :  { %v263_v60 = vpop.f32.mrf.mxu0  ;;  %1156 = vmatpush3.msra.mxu1 %v1154_v59 }
 0x131   :  { %1157 = vmatprep.subr.mxu1 %v263_v60 }
 0x132   :  { %1158 = vmatpush3.msra.mxu1 %v263_v60 }
 0x133   :  { %1159 = vmatprep.subr.mxu1 %v1151_v57 }
 0x134   :  { %1160 = vmatpush3.msra.mxu1 %v1151_v57 }
 0x135   :  { %1161 = vmatprep.subr.mxu1 %v253_v58 }
 0x136   :  { %1162 = vmatpush3.msra.mxu1 %v253_v58 }
 0x137   :  { %1163 = vmatprep.subr.mxu1 %v1148_v55 }
 0x138   :  { %1164 = vmatpush3.msra.mxu1 %v1148_v55 }
 0x139   :  { %1165 = vmatprep.subr.mxu1 %v243_v56 }
 0x13a   :  { %1166 = vmatpush3.msra.mxu1 %v243_v56 }
 0x13b   :  { %1167 = vmatprep.subr.mxu1 %v1145_v53 }
 0x13c   :  { %1168 = vmatpush3.msra.mxu1 %v1145_v53 }
 0x13d   :  { %1169 = vmatprep.subr.mxu1 %v233_v54 }
 0x13e   :  { %1170 = vmatpush3.msra.mxu1 %v233_v54 }
 0x13f   :  { %1171 = vmatprep.subr.mxu1 %v1142_v51 }
 0x140   :  { %1172 = vmatpush3.msra.mxu1 %v1142_v51 }
 0x141   :  { %1173 = vmatprep.subr.mxu1 %v223_v52 }
 0x142   :  { %1174 = vmatpush3.msra.mxu1 %v223_v52 }
 0x143   :  { %1175 = vmatprep.subr.mxu1 %v1139_v49 }
 0x144   :  { %1176 = vmatpush3.msra.mxu1 %v1139_v49 }
 0x145   :  { %1177 = vmatprep.subr.mxu1 %v213_v50 }
 0x146   :  { %1178 = vmatpush3.msra.mxu1 %v213_v50 }
 0x147   :  { %1179 = vmatprep.subr.mxu1 %v1136_v47 }
 0x148   :  { %1180 = vmatpush3.msra.mxu1 %v1136_v47 }
 0x149   :  { %1181 = vmatprep.subr.mxu1 %v203_v48 }
 0x14a   :  { %1182 = vmatpush3.msra.mxu1 %v203_v48 }
 0x14b   :  { %1183 = vmatprep.subr.mxu1 %v1133_v45 }
 0x14c   :  { %1184 = vmatpush3.msra.mxu1 %v1133_v45 }
 0x14d   :  { %1185 = vmatprep.subr.mxu1 %v193_v46 }
 0x14e   :  { %1186 = vmatpush3.msra.mxu1 %v193_v46 }
 0x14f   :  { %1188 = vmatmul.mubr.f32.vlgmr.msra.gmra.mxu1 %v1571_v61 }
 0x150   :  { %1190 = vmatprep.mubr.f32.mxu1 %v1573_v62 }
 0x153   :  { %1191 = vmatmul.mubr.f32.gmra.mxu1 %v1577_v63 }
 0x154   :  { %1193 = vmatprep.mubr.f32.mxu1 %v1579_v0 }
 0x157   :  { %1194 = vmatmul.mubr.f32.gmra.mxu1 %v1583_v1 }
 0x158   :  { %1196 = vmatprep.mubr.f32.mxu1 %v1585_v2 }
 0x15b   :  { %1197 = vmatmul.mubr.f32.gmra.mxu1 %v1589_v3 }
 0x15c   :  { %1199 = vmatprep.mubr.f32.mxu1 %v1591_v4 }
 0x15f   :  { %1200 = vmatmul.mubr.f32.gmra.mxu1 %v1595_v5 }
 0x160   :  { %1202 = vmatprep.mubr.f32.mxu1 %v1597_v6 }
 0x163   :  { %1203 = vmatmul.mubr.f32.gmra.mxu1 %v1601_v7 }
 0x164   :  { %1205 = vmatprep.mubr.f32.mxu1 %v1603_v8 }
 0x167   :  { %1206 = vmatmul.mubr.f32.gmra.mxu1 %v1607_v9 }
 0x168   :  { %1208 = vmatprep.mubr.f32.mxu1 %v1609_v10 }
 0x16b   :  { %1209 = vmatmul.mubr.f32.gmra.mxu1 %v1613_v11 }
 0x16c   :  { %1299 = vmatprep.mubr.f32.mxu1 %v1568_v32 }
 0x20f   :  { %v1189_v17 = vpop.f32.mrf.mxu1 }
 0x210   :  { %v351_v18 = vadd.f32 %v1189_v17, %v969_v16 }
 0x211   :  { %v345_v19 = vpop.f32.mrf.mxu1 }
 0x212   :  { %v346_v20 = vadd.f32 %v969_v16, %v345_v19  ;;  %v425_v23 = vmax.f32 %v351_v18, 0.0 }
 0x213   :  { %v1192_v21 = vpop.f32.mrf.mxu1 }
 0x214   :  { %v424_v22 = vmax.f32 %v346_v20, 0.0  ;;  %v361_v24 = vadd.f32 %v1192_v21, %v969_v16 }
 0x215   :  { %v355_v25 = vpop.f32.mrf.mxu1 }
 0x216   :  { %v356_v26 = vadd.f32 %v969_v16, %v355_v25  ;;  %1243 = vmatprep.mubr.f32.mxu0 %v424_v22  ;;  %v427_v29 = vmax.f32 %v361_v24, 0.0 }
 0x217   :  { %v1195_v27 = vpop.f32.mrf.mxu1  ;;  %1244 = vmatmul.mubr.f32.vlgmr.msra.gmra.mxu0 %v425_v23 }
 0x218   :  { %v426_v28 = vmax.f32 %v356_v26, 0.0  ;;  %v371_v30 = vadd.f32 %v1195_v27, %v969_v16 }
 0x219   :  { %v365_v31 = vpop.f32.mrf.mxu1 }
 0x21a   :  { %v366_v32 = vadd.f32 %v969_v16, %v365_v31  ;;  %1246 = vmatprep.mubr.f32.mxu0 %v426_v28  ;;  %v429_v35 = vmax.f32 %v371_v30, 0.0 }
 0x21b   :  { %v1198_v33 = vpop.f32.mrf.mxu1  ;;  %1247 = vmatmul.mubr.f32.gmra.mxu0 %v427_v29 }
 0x21c   :  { %v428_v34 = vmax.f32 %v366_v32, 0.0  ;;  %v381_v36 = vadd.f32 %v1198_v33, %v969_v16 }
 0x21d   :  { %v375_v37 = vpop.f32.mrf.mxu1 }
 0x21e   :  { %v376_v38 = vadd.f32 %v969_v16, %v375_v37  ;;  %1249 = vmatprep.mubr.f32.mxu0 %v428_v34  ;;  %v431_v41 = vmax.f32 %v381_v36, 0.0 }
 0x21f   :  { %v1201_v39 = vpop.f32.mrf.mxu1  ;;  %1250 = vmatmul.mubr.f32.gmra.mxu0 %v429_v35 }
 0x220   :  { %v430_v40 = vmax.f32 %v376_v38, 0.0  ;;  %v391_v42 = vadd.f32 %v1201_v39, %v969_v16 }
 0x221   :  { %v385_v43 = vpop.f32.mrf.mxu1 }
 0x222   :  { %v386_v44 = vadd.f32 %v969_v16, %v385_v43  ;;  %1252 = vmatprep.mubr.f32.mxu0 %v430_v40  ;;  %v433_v47 = vmax.f32 %v391_v42, 0.0 }
 0x223   :  { %v1204_v45 = vpop.f32.mrf.mxu1  ;;  %1253 = vmatmul.mubr.f32.gmra.mxu0 %v431_v41 }
 0x224   :  { %v432_v46 = vmax.f32 %v386_v44, 0.0  ;;  %v401_v48 = vadd.f32 %v1204_v45, %v969_v16 }
 0x225   :  { %v395_v49 = vpop.f32.mrf.mxu1 }
 0x226   :  { %v396_v50 = vadd.f32 %v969_v16, %v395_v49  ;;  %1255 = vmatprep.mubr.f32.mxu0 %v432_v46  ;;  %v435_v53 = vmax.f32 %v401_v48, 0.0 }
 0x227   :  { %v1207_v51 = vpop.f32.mrf.mxu1  ;;  %1256 = vmatmul.mubr.f32.gmra.mxu0 %v433_v47 }
 0x228   :  { %v434_v52 = vmax.f32 %v396_v50, 0.0  ;;  %v411_v54 = vadd.f32 %v1207_v51, %v969_v16 }
 0x229   :  { %v405_v55 = vpop.f32.mrf.mxu1 }
 0x22a   :  { %v406_v56 = vadd.f32 %v969_v16, %v405_v55  ;;  %1258 = vmatprep.mubr.f32.mxu0 %v434_v52  ;;  %v437_v59 = vmax.f32 %v411_v54, 0.0 }
 0x22b   :  { %v1210_v57 = vpop.f32.mrf.mxu1  ;;  %1259 = vmatmul.mubr.f32.gmra.mxu0 %v435_v53 }
 0x22c   :  { %v436_v58 = vmax.f32 %v406_v56, 0.0  ;;  %v421_v60 = vadd.f32 %v1210_v57, %v969_v16 }
 0x22d   :  { %v415_v12 = vpop.f32.mrf.mxu1 }
 0x22e   :  { %v416_v13 = vadd.f32 %v969_v16, %v415_v12  ;;  %1261 = vmatprep.mubr.f32.mxu0 %v436_v58  ;;  %v439_v15 = vmax.f32 %v421_v60, 0.0 }
 0x22f   :  { %1262 = vmatmul.mubr.f32.gmra.mxu0 %v437_v59 }
 0x230   :  { %v438_v14 = vmax.f32 %v416_v13, 0.0 }
 0x232   :  { %1264 = vmatprep.mubr.f32.mxu0 %v438_v14 }
 0x233   :  { %1265 = vmatmul.mubr.f32.gmra.mxu0 %v439_v15 }
 0x2d7   :  { %v1245_v17 = vpop.f32.mrf.mxu0 }
 0x2d9   :  { %v522_v18 = vpop.f32.mrf.mxu0 }
 0x2db   :  { %v1248_v19 = vpop.f32.mrf.mxu0 }
 0x2dd   :  { %v532_v20 = vpop.f32.mrf.mxu0 }
 0x2df   :  { %v1251_v21 = vpop.f32.mrf.mxu0 }
 0x2e1   :  { %v542_v22 = vpop.f32.mrf.mxu0 }
 0x2e3   :  { %v1254_v23 = vpop.f32.mrf.mxu0 }
 0x2e5   :  { %v552_v24 = vpop.f32.mrf.mxu0 }
 0x2e7   :  { %v1257_v25 = vpop.f32.mrf.mxu0 }
 0x2e9   :  { %v562_v26 = vpop.f32.mrf.mxu0 }
 0x2eb   :  { %v1260_v27 = vpop.f32.mrf.mxu0 }
 0x2ed   :  { %v572_v28 = vpop.f32.mrf.mxu0 }
 0x2ef   :  { %v1263_v29 = vpop.f32.mrf.mxu0 }
 0x2f1   :  { %v582_v16 = vpop.f32.mrf.mxu0 }
 0x2f3   :  { %v1266_v30 = vpop.f32.mrf.mxu0 }
 0x2f4   :  { %1267 = vmatprep.subr.mxu1 %v1266_v30 }
 0x2f5   :  { %v592_v31 = vpop.f32.mrf.mxu0  ;;  %1268 = vmatpush3.msra.mxu1 %v1266_v30 }
 0x2f6   :  { %1269 = vmatprep.subr.mxu1 %v592_v31 }
 0x2f7   :  { %1270 = vmatpush3.msra.mxu1 %v592_v31 }
 0x2f8   :  { %1271 = vmatprep.subr.mxu1 %v1263_v29 }
 0x2f9   :  { %1272 = vmatpush3.msra.mxu1 %v1263_v29 }
 0x2fa   :  { %1273 = vmatprep.subr.mxu1 %v582_v16 }
 0x2fb   :  { %1274 = vmatpush3.msra.mxu1 %v582_v16 }
 0x2fc   :  { %1275 = vmatprep.subr.mxu1 %v1260_v27 }
 0x2fd   :  { %1276 = vmatpush3.msra.mxu1 %v1260_v27 }
 0x2fe   :  { %1277 = vmatprep.subr.mxu1 %v572_v28 }
 0x2ff   :  { %1278 = vmatpush3.msra.mxu1 %v572_v28 }
 0x300   :  { %1279 = vmatprep.subr.mxu1 %v1257_v25 }
 0x301   :  { %1280 = vmatpush3.msra.mxu1 %v1257_v25 }
 0x302   :  { %1281 = vmatprep.subr.mxu1 %v562_v26 }
 0x303   :  { %1282 = vmatpush3.msra.mxu1 %v562_v26 }
 0x304   :  { %1283 = vmatprep.subr.mxu1 %v1254_v23 }
 0x305   :  { %1284 = vmatpush3.msra.mxu1 %v1254_v23 }
 0x306   :  { %1285 = vmatprep.subr.mxu1 %v552_v24 }
 0x307   :  { %1286 = vmatpush3.msra.mxu1 %v552_v24 }
 0x308   :  { %1287 = vmatprep.subr.mxu1 %v1251_v21 }
 0x309   :  { %1288 = vmatpush3.msra.mxu1 %v1251_v21 }
 0x30a   :  { %1289 = vmatprep.subr.mxu1 %v542_v22 }
 0x30b   :  { %1290 = vmatpush3.msra.mxu1 %v542_v22 }
 0x30c   :  { %1291 = vmatprep.subr.mxu1 %v1248_v19 }
 0x30d   :  { %1292 = vmatpush3.msra.mxu1 %v1248_v19 }
 0x30e   :  { %1293 = vmatprep.subr.mxu1 %v532_v20 }
 0x30f   :  { %1294 = vmatpush3.msra.mxu1 %v532_v20 }
 0x310   :  { %1295 = vmatprep.subr.mxu1 %v1245_v17 }
 0x311   :  { %1296 = vmatpush3.msra.mxu1 %v1245_v17 }
 0x312   :  { %1297 = vmatprep.subr.mxu1 %v522_v18 }
 0x313   :  { %1298 = vmatpush3.msra.mxu1 %v522_v18 }
 0x314   :  { %1300 = vmatmul.mubr.f32.vlgmr.msra.gmra.mxu1 %v1571_v61  ;;  %v753_v61 = vlaneseq }
 0x315   :  { %1302 = vmatprep.mubr.f32.mxu1 %v1573_v62 }
 0x316   :  { %v1635_v62 = vand.u32 127, %v753_v61 }
 0x318   :  { %1303 = vmatmul.mubr.f32.gmra.mxu1 %v1577_v63  ;;  %v970_v63 = vld [vmem:[%s1764_s5] ss:$0 sm:$0xff]  ;;  %vm755_vm0 = vcmp.lt.s32.totalorder %v1635_v62, 4  ;;  %s1508_s5 = smov [#allocation10]  }
 0x319   :  { %1305 = vmatprep.mubr.f32.mxu1 %v1579_v0  ;;  %s955_s18 = sshll.u32 %s1508_s5, 4  ;;  %s956_s18 = int_to_ptr.vmem [resolvable:$true] %s955_s18 }
 0x31a   :  { %s1474_s19 = scalar_lea.vmem %s956_s18, 2048  ;;  %p1479_p7 = scmp.lt.s32.totalorder %s956_s18, %s956_s18 }
 0x31b   :  { %p1475_p6 = scmp.ne.s32.totalorder %s956_s18, %s1474_s19  ;;  %p1480_p8 = scmp.lt.s32.totalorder %s1474_s19, %s1474_s19 }
 0x31c   :  { %1306 = vmatmul.mubr.f32.gmra.mxu1 %v1583_v1 }
 0x31d   :  { %1308 = vmatprep.mubr.f32.mxu1 %v1585_v2  ;;  %p1481_p9 = por %p1480_p8, %p1479_p7 }
 0x31f   :  { %p1482_p10 = pnand %p1481_p9, %p1475_p6 }
 0x320   :  { %1309 = vmatmul.mubr.f32.gmra.mxu1 %v1589_v3 }
 0x321   :  { %1311 = vmatprep.mubr.f32.mxu1 %v1591_v4 }
 0x324   :  { %1312 = vmatmul.mubr.f32.gmra.mxu1 %v1595_v5 }
 0x325   :  { %1314 = vmatprep.mubr.f32.mxu1 %v1597_v6 }
 0x328   :  { %1315 = vmatmul.mubr.f32.gmra.mxu1 %v1601_v7 }
 0x329   :  { %1317 = vmatprep.mubr.f32.mxu1 %v1603_v8 }
 0x32c   :  { %1318 = vmatmul.mubr.f32.gmra.mxu1 %v1607_v9 }
 0x32d   :  { %1320 = vmatprep.mubr.f32.mxu1 %v1609_v10 }
 0x330   :  { %1321 = vmatmul.mubr.f32.gmra.mxu1 %v1613_v11 }
 0x3d4   :  { %v1301_v0 = vpop.f32.mrf.mxu1 }
 0x3d5   :  { %v680_v1 = vadd.f32 %v1301_v0, %v970_v63 }
 0x3d6   :  { %v674_v2 = vpop.f32.mrf.mxu1 }
 0x3d7   :  { %v675_v3 = vadd.f32 %v970_v63, %v674_v2  ;;  %v759_v4 = vsel %vm755_vm0, %v680_v1, -1e+30 }
 0x3d8   :  { %776 = vmax.xlane.f32.xlu0 %v759_v4  ;;  %v1304_v5 = vpop.f32.mrf.mxu1 }
 0x3d9   :  { %v690_v6 = vadd.f32 %v1304_v5, %v970_v63  ;;  %v758_v10 = vsel %vm755_vm0, %v675_v3, -1e+30 }
 0x3da   :  { %v684_v7 = vpop.f32.mrf.mxu1 }
 0x3db   :  { %v685_v8 = vadd.f32 %v970_v63, %v684_v7  ;;  %v761_v9 = vsel %vm755_vm0, %v690_v6, -1e+30 }
 0x3dc   :  { %780 = vmax.xlane.f32.xlu1 %v761_v9  ;;  %v1307_v11 = vpop.f32.mrf.mxu1  ;;  %774 = vmax.xlane.f32.xlu0 %v758_v10 }
 0x3dd   :  { %v700_v33 = vadd.f32 %v1307_v11, %v970_v63  ;;  %v760_v35 = vsel %vm755_vm0, %v685_v8, -1e+30 }
 0x3de   :  { %v694_v32 = vpop.f32.mrf.mxu1 }
 0x3df   :  { %v695_v34 = vadd.f32 %v970_v63, %v694_v32  ;;  %v763_v41 = vsel %vm755_vm0, %v700_v33, -1e+30 }
 0x3e0   :  { %v1310_v36 = vpop.f32.mrf.mxu1  ;;  %778 = vmax.xlane.f32.xlu1 %v760_v35 }
 0x3e1   :  { %v762_v37 = vsel %vm755_vm0, %v695_v34, -1e+30  ;;  %v710_v39 = vadd.f32 %v1310_v36, %v970_v63 }
 0x3e2   :  { %v704_v38 = vpop.f32.mrf.mxu1  ;;  %782 = vmax.xlane.f32.xlu0 %v762_v37 }
 0x3e3   :  { %v705_v40 = vadd.f32 %v970_v63, %v704_v38  ;;  %v765_v47 = vsel %vm755_vm0, %v710_v39, -1e+30 }
 0x3e4   :  { %v1313_v42 = vpop.f32.mrf.mxu1  ;;  %784 = vmax.xlane.f32.xlu1 %v763_v41 }
 0x3e5   :  { %v764_v43 = vsel %vm755_vm0, %v705_v40, -1e+30  ;;  %v720_v45 = vadd.f32 %v1313_v42, %v970_v63 }
 0x3e6   :  { %v714_v44 = vpop.f32.mrf.mxu1  ;;  %786 = vmax.xlane.f32.xlu0 %v764_v43 }
 0x3e7   :  { %v715_v46 = vadd.f32 %v970_v63, %v714_v44  ;;  %v767_v53 = vsel %vm755_vm0, %v720_v45, -1e+30 }
 0x3e8   :  { %v1316_v48 = vpop.f32.mrf.mxu1  ;;  %788 = vmax.xlane.f32.xlu1 %v765_v47 }
 0x3e9   :  { %v766_v49 = vsel %vm755_vm0, %v715_v46, -1e+30  ;;  %v730_v51 = vadd.f32 %v1316_v48, %v970_v63 }
 0x3ea   :  { %v724_v50 = vpop.f32.mrf.mxu1  ;;  %790 = vmax.xlane.f32.xlu0 %v766_v49 }
 0x3eb   :  { %v725_v52 = vadd.f32 %v970_v63, %v724_v50  ;;  %v769_v59 = vsel %vm755_vm0, %v730_v51, -1e+30 }
 0x3ec   :  { %v1319_v54 = vpop.f32.mrf.mxu1  ;;  %792 = vmax.xlane.f32.xlu1 %v767_v53 }
 0x3ed   :  { %v768_v55 = vsel %vm755_vm0, %v725_v52, -1e+30  ;;  %v740_v57 = vadd.f32 %v1319_v54, %v970_v63 }
 0x3ee   :  { %v734_v56 = vpop.f32.mrf.mxu1  ;;  %794 = vmax.xlane.f32.xlu0 %v768_v55 }
 0x3ef   :  { %v735_v58 = vadd.f32 %v970_v63, %v734_v56  ;;  %v1672_v17 = vsel %vm755_vm0, %v740_v57, -1e+30 }
 0x3f0   :  { %v1322_v60 = vpop.f32.mrf.mxu1  ;;  %796 = vmax.xlane.f32.xlu1 %v769_v59 }
 0x3f1   :  { %v1667_v12 = vsel %vm755_vm0, %v735_v58, -1e+30  ;;  %v750_v14 = vadd.f32 %v1322_v60, %v970_v63 }
 0x3f2   :  { %v744_v13 = vpop.f32.mrf.mxu1  ;;  %798 = vmax.xlane.f32.xlu0 %v1667_v12 }
 0x3f3   :  { %v745_v15 = vadd.f32 %v970_v63, %v744_v13  ;;  %v1682_v19 = vsel %vm755_vm0, %v750_v14, -1e+30 }
 0x3f4   :  { %800 = vmax.xlane.f32.xlu1 %v1672_v17 }
 0x3f5   :  { %v1677_v18 = vsel %vm755_vm0, %v745_v15, -1e+30 }
 0x3f6   :  { %802 = vmax.xlane.f32.xlu0 %v1677_v18 }
 0x3f8   :  { %804 = vmax.xlane.f32.xlu1 %v1682_v19 }
 0x461   :  { %v777_v20 = vpop.xlane.xlu0 %776 }
 0x462   :  { %v1685_v21 = vsub.f32 %v759_v4, %v777_v20 }
 0x464   :  { %v824_v22 = vmul.f32 1.442695, %v1685_v21 }
 0x465   :  { %v781_v23 = vpop.xlane.xlu1 %780  ;;  %v775_v24 = vpop.xlane.xlu0 %774 }
 0x466   :  { %1330 = vpow2.f32 %v824_v22  ;;  %v1688_v25 = vsub.f32 %v761_v9, %v781_v23  ;;  %v1690_v26 = vsub.f32 %v758_v10, %v775_v24 }
 0x468   :  { %v828_v27 = vmul.f32 1.442695, %v1688_v25  ;;  %v822_v28 = vmul.f32 1.442695, %v1690_v26 }
 0x469   :  { %v779_v29 = vpop.xlane.xlu1 %778 }
 0x46a   :  { %1332 = vpow2.f32 %v828_v27  ;;  %v1694_v16 = vsub.f32 %v760_v35, %v779_v29 }
 0x46b   :  { %1334 = vpow2.f32 %v822_v28  ;;  %v783_v30 = vpop.xlane.xlu0 %782 }
 0x46c   :  { %v826_v31 = vmul.f32 1.442695, %v1694_v16  ;;  %v1697_v61 = vsub.f32 %v762_v37, %v783_v30 }
 0x46d   :  { %v785_v62 = vpop.xlane.xlu1 %784 }
 0x46e   :  { %1336 = vpow2.f32 %v826_v31  ;;  %v1699_v63 = vsub.f32 %v763_v41, %v785_v62  ;;  %v830_v0 = vmul.f32 1.442695, %v1697_v61 }
 0x46f   :  { %v787_v1 = vpop.xlane.xlu0 %786 }
 0x470   :  { %v832_v2 = vmul.f32 1.442695, %v1699_v63  ;;  %v1703_v3 = vsub.f32 %v764_v43, %v787_v1 }
 0x471   :  { %v789_v4 = vpop.xlane.xlu1 %788 }
 0x472   :  { %1338 = vpow2.f32 %v832_v2  ;;  %v1705_v5 = vsub.f32 %v765_v47, %v789_v4  ;;  %v834_v7 = vmul.f32 1.442695, %v1703_v3 }
 0x473   :  { %v1331_v6 = vpop.eup %1330  ;;  %1340 = vpow2.f32 %v830_v0  ;;  %v791_v8 = vpop.xlane.xlu0 %790 }
 0x474   :  { %v836_v9 = vmul.f32 1.442695, %v1705_v5  ;;  %v1709_v10 = vsub.f32 %v766_v49, %v791_v8  ;;  %856 = vadd.xlane.f32.xlu1 %v1331_v6 }
 0x475   :  { %v793_v11 = vpop.xlane.xlu1 %792 }
 0x476   :  { %1342 = vpow2.f32 %v836_v9  ;;  %v1711_v32 = vsub.f32 %v767_v53, %v793_v11  ;;  %v838_v34 = vmul.f32 1.442695, %v1709_v10 }
 0x477   :  { %v1333_v33 = vpop.eup %1332  ;;  %1344 = vpow2.f32 %v834_v7  ;;  %v795_v35 = vpop.xlane.xlu0 %794 }
 0x478   :  { %v1335_v36 = vpop.eup %1334  ;;  %v840_v37 = vmul.f32 1.442695, %v1711_v32  ;;  %v1715_v38 = vsub.f32 %v768_v55, %v795_v35  ;;  %860 = vadd.xlane.f32.xlu1 %v1333_v33 }
 0x479   :  { %854 = vadd.xlane.f32.xlu0 %v1335_v36  ;;  %v797_v39 = vpop.xlane.xlu1 %796 }
 0x47a   :  { %1346 = vpow2.f32 %v840_v37  ;;  %v1717_v40 = vsub.f32 %v769_v59, %v797_v39  ;;  %v842_v42 = vmul.f32 1.442695, %v1715_v38 }
 0x47b   :  { %v1337_v41 = vpop.eup %1336  ;;  %1348 = vpow2.f32 %v838_v34  ;;  %v799_v43 = vpop.xlane.xlu0 %798 }
 0x47c   :  { %v844_v44 = vmul.f32 1.442695, %v1717_v40  ;;  %v1722_v45 = vsub.f32 %v1667_v12, %v799_v43 }
 0x47d   :  { %858 = vadd.xlane.f32.xlu0 %v1337_v41  ;;  %v801_v46 = vpop.xlane.xlu1 %800 }
 0x47e   :  { %1350 = vpow2.f32 %v844_v44  ;;  %v1725_v47 = vsub.f32 %v1672_v17, %v801_v46  ;;  %v846_v49 = vmul.f32 1.442695, %v1722_v45 }
 0x47f   :  { %v1339_v48 = vpop.eup %1338  ;;  %1352 = vpow2.f32 %v842_v42  ;;  %v803_v50 = vpop.xlane.xlu0 %802 }
 0x480   :  { %v1341_v51 = vpop.eup %1340  ;;  %v848_v52 = vmul.f32 1.442695, %v1725_v47  ;;  %v1730_v53 = vsub.f32 %v1677_v18, %v803_v50  ;;  %864 = vadd.xlane.f32.xlu1 %v1339_v48 }
 0x481   :  { %862 = vadd.xlane.f32.xlu0 %v1341_v51  ;;  %v805_v54 = vpop.xlane.xlu1 %804 }
 0x482   :  { %1354 = vpow2.f32 %v848_v52  ;;  %v1733_v55 = vsub.f32 %v1682_v19, %v805_v54  ;;  %v850_v57 = vmul.f32 1.442695, %v1730_v53 }
 0x483   :  { %v1343_v56 = vpop.eup %1342  ;;  %1356 = vpow2.f32 %v846_v49 }
 0x484   :  { %v1345_v58 = vpop.eup %1344  ;;  %v852_v59 = vmul.f32 1.442695, %v1733_v55  ;;  %868 = vadd.xlane.f32.xlu1 %v1343_v56 }
 0x485   :  { %866 = vadd.xlane.f32.xlu0 %v1345_v58 }
 0x486   :  { %1358 = vpow2.f32 %v852_v59 }
 0x487   :  { %v1347_v60 = vpop.eup %1346  ;;  %1360 = vpow2.f32 %v850_v57 }
 0x488   :  { %v1349_v12 = vpop.eup %1348  ;;  %872 = vadd.xlane.f32.xlu1 %v1347_v60 }
 0x489   :  { %870 = vadd.xlane.f32.xlu0 %v1349_v12 }
 0x48b   :  { %v1351_v13 = vpop.eup %1350 }
 0x48c   :  { %v1353_v14 = vpop.eup %1352  ;;  %876 = vadd.xlane.f32.xlu1 %v1351_v13 }
 0x48d   :  { %874 = vadd.xlane.f32.xlu0 %v1353_v14 }
 0x48f   :  { %v1355_v15 = vpop.eup %1354 }
 0x490   :  { %v1357_v17 = vpop.eup %1356  ;;  %880 = vadd.xlane.f32.xlu1 %v1355_v15 }
 0x491   :  { %878 = vadd.xlane.f32.xlu0 %v1357_v17 }
 0x493   :  { %v1359_v18 = vpop.eup %1358 }
 0x494   :  { %v1361_v19 = vpop.eup %1360  ;;  %884 = vadd.xlane.f32.xlu1 %v1359_v18 }
 0x495   :  { %882 = vadd.xlane.f32.xlu0 %v1361_v19 }
 0x4fd   :  { %v857_v20 = vpop.xlane.xlu1 %856 }
 0x4fe   :  { %1362 = vlog2.f32 %v857_v20 }
 0x501   :  { %v861_v22 = vpop.xlane.xlu1 %860 }
 0x502   :  { %1364 = vlog2.f32 %v861_v22  ;;  %v855_v23 = vpop.xlane.xlu0 %854 }
 0x503   :  { %1366 = vlog2.f32 %v855_v23 }
 0x506   :  { %v859_v24 = vpop.xlane.xlu0 %858 }
 0x507   :  { %1368 = vlog2.f32 %v859_v24 }
 0x509   :  { %v865_v27 = vpop.xlane.xlu1 %864 }
 0x50a   :  { %1370 = vlog2.f32 %v865_v27  ;;  %v863_v28 = vpop.xlane.xlu0 %862 }
 0x50b   :  { %v1363_v29 = vpop.eup %1362  ;;  %1372 = vlog2.f32 %v863_v28 }
 0x50c   :  { %v889_v30 = vmul.f32 0.6931472, %v1363_v29 }
 0x50d   :  { %v869_v31 = vpop.xlane.xlu1 %868 }
 0x50e   :  { %v919_v62 = vsub.f32 %v1685_v21, %v889_v30  ;;  %1374 = vlog2.f32 %v869_v31  ;;  %v867_v0 = vpop.xlane.xlu0 %866 }
 0x50f   :  { %v1365_v1 = vpop.eup %1364  ;;  %1376 = vlog2.f32 %v867_v0 }
 0x510   :  { %v1367_v2 = vpop.eup %1366  ;;  %935 = vst [vmem:[#allocation10 + $0x8] sm:$0xff] %v919_v62  ;;  %v893_v4 = vmul.f32 0.6931472, %v1365_v1 }
 0x511   :  { %v887_v6 = vmul.f32 0.6931472, %v1367_v2  ;;  %v873_v7 = vpop.xlane.xlu1 %872 }
 0x512   :  { %v921_v8 = vsub.f32 %v1688_v25, %v893_v4  ;;  %1378 = vlog2.f32 %v873_v7  ;;  %v871_v9 = vpop.xlane.xlu0 %870 }
 0x513   :  { %v918_v11 = vsub.f32 %v1690_v26, %v887_v6  ;;  %1380 = vlog2.f32 %v871_v9 }
 0x514   :  { %v1369_v33 = vpop.eup %1368  ;;  %937 = vst [vmem:[#allocation10 + $0x18] sm:$0xff] %v921_v8 }
 0x515   :  { %934 = vst [vmem:[#allocation10] sm:$0xff] %v918_v11  ;;  %v891_v21 = vmul.f32 0.6931472, %v1369_v33  ;;  %v877_v34 = vpop.xlane.xlu1 %876 }
 0x516   :  { %1382 = vlog2.f32 %v877_v34  ;;  %v875_v35 = vpop.xlane.xlu0 %874 }
 0x517   :  { %v1371_v36 = vpop.eup %1370  ;;  %v920_v37 = vsub.f32 %v1694_v16, %v891_v21  ;;  %1384 = vlog2.f32 %v875_v35 }
 0x518   :  { %v1373_v39 = vpop.eup %1372  ;;  %v897_v41 = vmul.f32 0.6931472, %v1371_v36 }
 0x519   :  { %936 = vst [vmem:[#allocation10 + $0x10] sm:$0xff] %v920_v37  ;;  %v895_v25 = vmul.f32 0.6931472, %v1373_v39  ;;  %v881_v42 = vpop.xlane.xlu1 %880 }
 0x51a   :  { %v923_v43 = vsub.f32 %v1699_v63, %v897_v41  ;;  %1386 = vlog2.f32 %v881_v42  ;;  %v879_v26 = vpop.xlane.xlu0 %878 }
 0x51b   :  { %v1375_v44 = vpop.eup %1374  ;;  %v922_v46 = vsub.f32 %v1697_v61, %v895_v25  ;;  %1388 = vlog2.f32 %v879_v26 }
 0x51c   :  { %v1377_v48 = vpop.eup %1376  ;;  %939 = vst [vmem:[#allocation10 + $0x28] sm:$0xff] %v923_v43  ;;  %v901_v49 = vmul.f32 0.6931472, %v1375_v44 }
 0x51d   :  { %938 = vst [vmem:[#allocation10 + $0x20] sm:$0xff] %v922_v46  ;;  %v899_v50 = vmul.f32 0.6931472, %v1377_v48  ;;  %v885_v16 = vpop.xlane.xlu1 %884 }
 0x51e   :  { %v925_v51 = vsub.f32 %v1705_v5, %v901_v49  ;;  %1390 = vlog2.f32 %v885_v16  ;;  %v883_v52 = vpop.xlane.xlu0 %882 }
 0x51f   :  { %v1379_v54 = vpop.eup %1378  ;;  %v924_v56 = vsub.f32 %v1703_v3, %v899_v50  ;;  %1392 = vlog2.f32 %v883_v52 }
 0x520   :  { %v1381_v63 = vpop.eup %1380  ;;  %941 = vst [vmem:[#allocation10 + $0x38] sm:$0xff] %v925_v51  ;;  %v905_v57 = vmul.f32 0.6931472, %v1379_v54 }
 0x521   :  { %940 = vst [vmem:[#allocation10 + $0x30] sm:$0xff] %v924_v56  ;;  %v903_v61 = vmul.f32 0.6931472, %v1381_v63 }
 0x522   :  { %v927_v58 = vsub.f32 %v1711_v32, %v905_v57 }
 0x523   :  { %v1383_v59 = vpop.eup %1382  ;;  %v926_v60 = vsub.f32 %v1709_v10, %v903_v61 }
 0x524   :  { %v1385_v12 = vpop.eup %1384  ;;  %943 = vst [vmem:[#allocation10 + $0x48] sm:$0xff] %v927_v58  ;;  %v909_v13 = vmul.f32 0.6931472, %v1383_v59 }
 0x525   :  { %942 = vst [vmem:[#allocation10 + $0x40] sm:$0xff] %v926_v60  ;;  %v907_v5 = vmul.f32 0.6931472, %v1385_v12 }
 0x526   :  { %v929_v14 = vsub.f32 %v1717_v40, %v909_v13 }
 0x527   :  { %v1387_v15 = vpop.eup %1386  ;;  %v928_v3 = vsub.f32 %v1715_v38, %v907_v5 }
 0x528   :  { %v1389_v17 = vpop.eup %1388  ;;  %945 = vst [vmem:[#allocation10 + $0x58] sm:$0xff] %v929_v14  ;;  %v913_v18 = vmul.f32 0.6931472, %v1387_v15 }
 0x529   :  { %944 = vst [vmem:[#allocation10 + $0x50] sm:$0xff] %v928_v3  ;;  %v911_v19 = vmul.f32 0.6931472, %v1389_v17 }
 0x52a   :  { %v931_v32 = vsub.f32 %v1725_v47, %v913_v18 }
 0x52b   :  { %v1391_v20 = vpop.eup %1390  ;;  %v930_v10 = vsub.f32 %v1722_v45, %v911_v19 }
 0x52c   :  { %v1393_v22 = vpop.eup %1392  ;;  %947 = vst [vmem:[#allocation10 + $0x68] sm:$0xff] %v931_v32  ;;  %v917_v23 = vmul.f32 0.6931472, %v1391_v20 }
 0x52d   :  { %946 = vst [vmem:[#allocation10 + $0x60] sm:$0xff] %v930_v10  ;;  %v915_v40 = vmul.f32 0.6931472, %v1393_v22 }
 0x52e   :  { %v933_v24 = vsub.f32 %v1733_v55, %v917_v23 }
 0x52f   :  { %v932_v38 = vsub.f32 %v1730_v53, %v915_v40 }
 0x530   :  { %949 = vst [vmem:[#allocation10 + $0x78] sm:$0xff] %v933_v24 }
 0x531   :  { %948 = vst [vmem:[#allocation10 + $0x70] sm:$0xff] %v932_v38 }
 0x532   :  { %1485 = shalt.err (!%p1482_p10)
}
 0x533   :  { %961 = dma.vmem_to_hbm [thread:$0]  %s956_s18, 2048, %s1765_s6, [#allocation4], %s1504_s26, %s1504_s26, %s1505_s27  }
 0x534   :  { %1500 = dma.done.wait [#allocation4], 2048  }
 0x535   :  { %1501 = vsyncadd [#allocation4], 4294965248 }
 0x536   :  { %965 = vsyncpa [#allocation3], 1 }
 0x537   :  { %966 = vsyncpa [#allocation6], 1 }
 0x538   :  { %967 = vsyncpa [#allocation9], 1 }
 0x539   :  { %968 = vsyncpa [#allocation4], 1 }

</bundles_post_ra>
